<compile_context>
chip_gen: v7x
topology: tpu7x:2x2x1
jax: 0.10.0
libtpu: 0.0.40
codegen_flags: <defaults>
</compile_context>

<pallas_src>
import functools

import jax
import jax.numpy as jnp
from jax.experimental import pallas as pl
from jax.experimental.pallas import tpu as pltpu

EMBEDDING_DIM = 64
WINDOW_SIZE = 3
FEATURE_DIM = EMBEDDING_DIM // 4          # 16
INPUT_DIM = FEATURE_DIM                   # == feature_dim -> no dim_adapter
FREQ_DIM = EMBEDDING_DIM // 2 + 1         # 33  (F in the docstring)
BATCH_TILE = 1024                         # max rows per grid step (multiple of 8)

_INV_SQRT2 = 0.7071067811865476


def _round_up(x, m):
    return ((x + m - 1) // m) * m


def _tracker_kernel(x_ref, w1_ref, p_ref, out_ref, *,
                    t_total, f_dim, window, cutoff, embedding_dim, lane_base):
    """One batch tile.

    x_ref:   [Bt, L] lane-block of the flattened [B, T*F] input that contains
             every window lane (L = 128 in the fast path).
    out_ref: [Bt, 2] packed (repetition_score, dtw_similarity).
    """
    n = window * cutoff
    base_t = t_total - window
    lane_width = x_ref.shape[1]

    x_raw = x_ref[...]                                             # [Bt, L]

    # --- nan_to_num(nan=0, posinf=1, neginf=-1) ------------------------------
    # NaN -> 0 unconditionally (identical to torch whenever no NaNs exist).
    # TODO(synk): torch gates the +/-inf replacement on isnan(full_tensor).any();
    # here the gate is per-row over the lanes this kernel actually reads.
    nan_mask = jnp.isnan(x_raw)
    row_has_nan = jnp.max(nan_mask.astype(jnp.float32), axis=1, keepdims=True) > 0.0
    x_s = jnp.where(nan_mask, jnp.float32(0.0), x_raw)
    x_s = jnp.where(row_has_nan & (x_s == jnp.inf), jnp.float32(1.0), x_s)
    x_s = jnp.where(row_has_nan & (x_s == -jnp.inf), jnp.float32(-1.0), x_s)

    # --- DTW similarity (length-1 sequences): exp(-||first - last||_2 / D) ---
    # Hoisted right after sanitisation so the x_s slices die early.
    off_first = base_t * f_dim - lane_base
    off_last = (t_total - 1) * f_dim - lane_base
    d0 = x_s[:, off_first:off_first + cutoff] - x_s[:, off_last:off_last + cutoff]
    dist = jnp.sqrt(jnp.sum(d0 * d0, axis=1, keepdims=True))
    dtw = jnp.exp(dist * jnp.float32(-1.0 / embedding_dim))        # [Bt, 1]

    # --- abs/clamp + per-sample standardisation: full-width + lane mask ------
    lane_idx = jax.lax.broadcasted_iota(jnp.int32, (1, lane_width), 1)
    in_win = None
    for w in range(window):
        off = (base_t + w) * f_dim - lane_base
        m = (lane_idx >= off) & (lane_idx < off + cutoff)
        in_win = m if in_win is None else jnp.logical_or(in_win, m)

    mag = jnp.where(in_win, jnp.clip(jnp.abs(x_s), 1e-5, 10.0), jnp.float32(0.0))
    mean = jnp.sum(mag, axis=1, keepdims=True) * jnp.float32(1.0 / n)
    mag_last = mag[:, off_last:off_last + cutoff]                  # [Bt, cutoff]
    d = jnp.where(in_win, mag - mean, jnp.float32(0.0))
    var_u = jnp.sum(d * d, axis=1, keepdims=True) * jnp.float32(1.0 / max(n - 1, 1))
    std = jnp.sqrt(var_u) + 1e-5                                   # unbiased std + eps

    # standardized last time-step == latest_features (exact divide for parity)
    latest = jnp.clip((mag_last - mean) / std, -3.0, 3.0)          # [Bt, cutoff]

    # --- pattern_detector: Linear -> LayerNorm(eps=1e-5) -> exact GELU -------
    p = p_ref[...]                                                 # packed small params
    b1, gamma, beta, w2 = p[0:1, :], p[1:2, :], p[2:3, :], p[3:4, :]
    b2 = p[4:5, 0:1]
    h = jnp.dot(latest, w1_ref[...], preferred_element_type=jnp.float32) + b1
    mu = jnp.mean(h, axis=1, keepdims=True)
    hc = h - mu                                                    # reused (CSE)
    var = jnp.mean(hc * hc, axis=1, keepdims=True)                 # biased var (LN default)
    h = hc * jax.lax.rsqrt(var + 1e-5) * gamma + beta
    h = 0.5 * h * (1.0 + jax.lax.erf(h * jnp.float32(_INV_SQRT2)))

    # --- repetition_classifier: Linear(feature_dim, 1) -> Sigmoid ------------
    logit = jnp.sum(h * w2, axis=1, keepdims=True) + b2
    score = jax.nn.sigmoid(logit)                                  # [Bt, 1]

    # Single merged (bt, 2) store (one vst per 8-row group instead of two
    # masked column stores); built with a lane-iota select to avoid a concat.
    col = jax.lax.broadcasted_iota(jnp.int32, (score.shape[0], 2), 1)
    out_ref[...] = jnp.where(col == 0, score, dtw)


def init_params(key):
    """Returns (w1 [F_d,F_d], packed [8,F_d]) with rows: b1, gamma, beta, w2, b2."""
    k1, k2 = jax.random.split(key, 2)
    # pattern_detector[0]: Linear(feature_dim, feature_dim), stored as [in, out]
    # so the kernel computes x @ W (transpose torch weights for a checkpoint).
    limit1 = (6.0 / (FEATURE_DIM + FEATURE_DIM)) ** 0.5
    w1 = jax.random.uniform(k1, (FEATURE_DIM, FEATURE_DIM), jnp.float32,
                            -limit1, limit1)
    # repetition_classifier[0]: Linear(feature_dim, 1) stored as a row vector
    limit2 = (6.0 / (FEATURE_DIM + 1)) ** 0.5
    w2_row = jax.random.uniform(k2, (FEATURE_DIM,), jnp.float32, -limit2, limit2)

    packed = jnp.zeros((8, FEATURE_DIM), jnp.float32)
    packed = packed.at[1, :].set(1.0)        # row 1: LayerNorm gamma (ones)
    packed = packed.at[3, :].set(w2_row)     # row 3: classifier weight
    # rows 0 (b1), 2 (beta), 4 (b2 at [4,0]) stay zero
    return w1, packed


def dtw_repetitive_interest_tracker(freq_history, params):
    """Returns (repetition_scores [B,1], {'repetition_scores', 'dtw_similarity'})."""
    B, T, F = freq_history.shape
    W = min(WINDOW_SIZE, T)
    cutoff = int(F * 0.5)
    w1, packed = params

    # Free, contiguous reshape (no HBM round-trip): [B, T, F] -> [B, T*F].
    x2d = freq_history.reshape(B, T * F)
    if x2d.dtype != jnp.float32:
        x2d = x2d.astype(jnp.float32)

    # Shrink the input DMA to the single 128-lane block covering all window
    # lanes when possible; otherwise fall back to the full flattened row.
    total_lanes = T * F
    lane_lo = (T - W) * F
    lane_hi = (T - 1) * F + cutoff - 1
    if (lane_lo // 128 == lane_hi // 128) and ((lane_lo // 128 + 1) * 128 <= total_lanes):
        lane_block = lane_lo // 128
        lane_width = 128
    else:
        lane_block = 0
        lane_width = total_lanes
    lane_base = lane_block * lane_width

    # Batch tiling: >=2 grid steps for mid/large batches (both TCs on v7x),
    # exact full-batch block for tiny batches.
    if B <= 8:
        bt = B
    else:
        bt = min(BATCH_TILE, max(256, _round_up(pl.cdiv(B, 2), 8)))
        bt = min(bt, _round_up(B, 8))
    grid = (pl.cdiv(B, bt),)

    kernel = functools.partial(
        _tracker_kernel, t_total=T, f_dim=F, window=W, cutoff=cutoff,
        embedding_dim=EMBEDDING_DIM, lane_base=lane_base)

    out = pl.pallas_call(
        kernel,
        grid=grid,
        out_shape=jax.ShapeDtypeStruct((B, 2), jnp.float32),
        in_specs=[
            pl.BlockSpec((bt, lane_width), lambda i, _lb=lane_block: (i, _lb)),
            pl.BlockSpec((FEATURE_DIM, FEATURE_DIM), lambda i: (0, 0)),
            pl.BlockSpec((8, FEATURE_DIM), lambda i: (0, 0)),
        ],
        out_specs=pl.BlockSpec((bt, 2), lambda i: (i, 0)),
        compiler_params=pltpu.CompilerParams(
            dimension_semantics=("parallel",)),
    )(x2d, w1, packed)

    score = out[:, 0:1]
    dtw_sim = out[:, 1:2]
    dtw_patterns = {"repetition_scores": score}
    if W >= 2:  # mirrors `if self.dtw_enabled and freq_history.shape[1] >= 2`
        dtw_patterns["dtw_similarity"] = dtw_sim
    return score, dtw_patterns


# TODO(synk): the Python-side DTW result cache (dict keyed by tensor bytes) and
# the general O(n*m) DTW dynamic program for sequences longer than 2 are not
# reachable from this forward pass (the compared sequences have length 1) and
# are not implemented in the kernel.

if __name__ == "__main__":
    key = jax.random.PRNGKey(0)
    kx, kp = jax.random.split(key)

    B, T = 2, 8
    freq_history = jax.random.normal(kx, (B, T, FREQ_DIM), jnp.float32)
    params = init_params(kp)

    score, patterns = dtw_repetitive_interest_tracker(freq_history, params)
    jax.block_until_ready((score, patterns["dtw_similarity"]))

    assert score.shape == (B, 1)
    assert patterns["dtw_similarity"].shape == (B, 1)
    print("KERNEL_OK")
</pallas_src>

<mosaic_0001>
module attributes {stable_mosaic.version = 11 : i64} {
  func.func @_tracker_kernel(%arg0: i32, %arg1: memref<2x128xf32, #tpu.memory_space<vmem>>, %arg2: memref<16x16xf32, #tpu.memory_space<vmem>>, %arg3: memref<8x16xf32, #tpu.memory_space<vmem>>, %arg4: memref<2x2xf32, #tpu.memory_space<vmem>>) attributes {dimension_semantics = [#tpu.dimension_semantics<parallel>], iteration_bounds = array<i64: 1>, scalar_prefetch = 0 : i64, scratch_operands = 0 : i64, tpu.core_type = #tpu.core_type<tc>, window_params = [{transform_indices = @transform_0, window_bounds = array<i64: 2, 128>}, {pipeline_mode = #tpu.pipeline_mode<synchronous>, transform_indices = @transform_1, window_bounds = array<i64: 16, 16>}, {pipeline_mode = #tpu.pipeline_mode<synchronous>, transform_indices = @transform_2, window_bounds = array<i64: 8, 16>}, {transform_indices = @transform_3, window_bounds = array<i64: 2, 2>}]} {
    %c0 = arith.constant 0 : index
    %c0_0 = arith.constant 0 : index
    %0 = vector.load %arg1[%c0, %c0_0] : memref<2x128xf32, #tpu.memory_space<vmem>>, vector<2x128xf32>
    %1 = arith.cmpf one, %0, %0 : vector<2x128xf32>
    %2 = arith.extui %1 : vector<2x128xi1> to vector<2x128xi32>
    %3 = arith.sitofp %2 : vector<2x128xi32> to vector<2x128xf32>
    %cst = arith.constant dense<0xFF800000> : vector<2xf32>
    %4 = vector.multi_reduction <maximumf>, %3, %cst [1] : vector<2x128xf32> to vector<2xf32>
    %5 = vector.shape_cast %4 : vector<2xf32> to vector<2x1xf32>
    %cst_1 = arith.constant 0.000000e+00 : f32
    %6 = vector.broadcast %cst_1 : f32 to vector<2x1xf32>
    %7 = arith.cmpf ogt, %5, %6 : vector<2x1xf32>
    %cst_2 = arith.constant 0.000000e+00 : f32
    %8 = vector.broadcast %cst_2 : f32 to vector<2x128xf32>
    %9 = arith.select %1, %8, %0 : vector<2x128xi1>, vector<2x128xf32>
    %cst_3 = arith.constant 0x7F800000 : f32
    %10 = vector.broadcast %cst_3 : f32 to vector<2x128xf32>
    %11 = arith.cmpf oeq, %9, %10 : vector<2x128xf32>
    %12 = vector.broadcast %7 : vector<2x1xi1> to vector<2x128xi1>
    %13 = arith.andi %12, %11 : vector<2x128xi1>
    %cst_4 = arith.constant 1.000000e+00 : f32
    %14 = vector.broadcast %cst_4 : f32 to vector<2x128xf32>
    %15 = arith.select %13, %14, %9 : vector<2x128xi1>, vector<2x128xf32>
    %cst_5 = arith.constant 0xFF800000 : f32
    %16 = vector.broadcast %cst_5 : f32 to vector<2x128xf32>
    %17 = arith.cmpf oeq, %15, %16 : vector<2x128xf32>
    %18 = vector.broadcast %7 : vector<2x1xi1> to vector<2x128xi1>
    %19 = arith.andi %18, %17 : vector<2x128xi1>
    %cst_6 = arith.constant -1.000000e+00 : f32
    %20 = vector.broadcast %cst_6 : f32 to vector<2x128xf32>
    %21 = arith.select %19, %20, %15 : vector<2x128xi1>, vector<2x128xf32>
    %22 = vector.extract_strided_slice %21 {offsets = [0, 37], sizes = [2, 16], strides = [1, 1]} : vector<2x128xf32> to vector<2x16xf32>
    %23 = vector.extract_strided_slice %21 {offsets = [0, 103], sizes = [2, 16], strides = [1, 1]} : vector<2x128xf32> to vector<2x16xf32>
    %24 = arith.subf %22, %23 : vector<2x16xf32>
    %25 = arith.mulf %24, %24 : vector<2x16xf32>
    %cst_7 = arith.constant dense<0.000000e+00> : vector<2xf32>
    %26 = vector.multi_reduction <add>, %25, %cst_7 [1] : vector<2x16xf32> to vector<2xf32>
    %27 = vector.shape_cast %26 : vector<2xf32> to vector<2x1xf32>
    %28 = math.sqrt %27 : vector<2x1xf32>
    %cst_8 = arith.constant -1.562500e-02 : f32
    %29 = vector.broadcast %cst_8 : f32 to vector<2x1xf32>
    %30 = arith.mulf %28, %29 : vector<2x1xf32>
    %31 = math.exp %30 : vector<2x1xf32>
    %32 = tpu.iota {dimensions = array<i32: 1>} : vector<1x128xi32>
    %c37_i32 = arith.constant 37 : i32
    %33 = vector.broadcast %c37_i32 : i32 to vector<1x128xi32>
    %34 = arith.cmpi sge, %32, %33 : vector<1x128xi32>
    %c53_i32 = arith.constant 53 : i32
    %35 = vector.broadcast %c53_i32 : i32 to vector<1x128xi32>
    %36 = arith.cmpi slt, %32, %35 : vector<1x128xi32>
    %37 = arith.andi %34, %36 : vector<1x128xi1>
    %c70_i32 = arith.constant 70 : i32
    %38 = vector.broadcast %c70_i32 : i32 to vector<1x128xi32>
    %39 = arith.cmpi sge, %32, %38 : vector<1x128xi32>
    %c86_i32 = arith.constant 86 : i32
    %40 = vector.broadcast %c86_i32 : i32 to vector<1x128xi32>
    %41 = arith.cmpi slt, %32, %40 : vector<1x128xi32>
    %42 = arith.andi %39, %41 : vector<1x128xi1>
    %43 = arith.ori %37, %42 : vector<1x128xi1>
    %c103_i32 = arith.constant 103 : i32
    %44 = vector.broadcast %c103_i32 : i32 to vector<1x128xi32>
    %45 = arith.cmpi sge, %32, %44 : vector<1x128xi32>
    %c119_i32 = arith.constant 119 : i32
    %46 = vector.broadcast %c119_i32 : i32 to vector<1x128xi32>
    %47 = arith.cmpi slt, %32, %46 : vector<1x128xi32>
    %48 = arith.andi %45, %47 : vector<1x128xi1>
    %49 = arith.ori %43, %48 : vector<1x128xi1>
    %50 = math.absf %21 : vector<2x128xf32>
    %cst_9 = arith.constant 9.99999974E-6 : f32
    %cst_10 = arith.constant 1.000000e+01 : f32
    %51 = vector.broadcast %cst_9 : f32 to vector<2x128xf32>
    %52 = arith.maximumf %51, %50 : vector<2x128xf32>
    %53 = vector.broadcast %cst_10 : f32 to vector<2x128xf32>
    %54 = arith.minimumf %53, %52 : vector<2x128xf32>
    %cst_11 = arith.constant 0.000000e+00 : f32
    %55 = vector.shape_cast %49 : vector<1x128xi1> to vector<1x128xi1>
    %56 = vector.broadcast %55 : vector<1x128xi1> to vector<2x128xi1>
    %57 = vector.broadcast %cst_11 : f32 to vector<2x128xf32>
    %58 = arith.select %56, %54, %57 : vector<2x128xi1>, vector<2x128xf32>
    %cst_12 = arith.constant dense<0.000000e+00> : vector<2xf32>
    %59 = vector.multi_reduction <add>, %58, %cst_12 [1] : vector<2x128xf32> to vector<2xf32>
    %60 = vector.shape_cast %59 : vector<2xf32> to vector<2x1xf32>
    %cst_13 = arith.constant 0.020833334 : f32
    %61 = vector.broadcast %cst_13 : f32 to vector<2x1xf32>
    %62 = arith.mulf %60, %61 : vector<2x1xf32>
    %63 = vector.extract_strided_slice %58 {offsets = [0, 103], sizes = [2, 16], strides = [1, 1]} : vector<2x128xf32> to vector<2x16xf32>
    %64 = vector.broadcast %62 : vector<2x1xf32> to vector<2x128xf32>
    %65 = arith.subf %58, %64 : vector<2x128xf32>
    %cst_14 = arith.constant 0.000000e+00 : f32
    %66 = vector.shape_cast %49 : vector<1x128xi1> to vector<1x128xi1>
    %67 = vector.broadcast %66 : vector<1x128xi1> to vector<2x128xi1>
    %68 = vector.broadcast %cst_14 : f32 to vector<2x128xf32>
    %69 = arith.select %67, %65, %68 : vector<2x128xi1>, vector<2x128xf32>
    %70 = arith.mulf %69, %69 : vector<2x128xf32>
    %cst_15 = arith.constant dense<0.000000e+00> : vector<2xf32>
    %71 = vector.multi_reduction <add>, %70, %cst_15 [1] : vector<2x128xf32> to vector<2xf32>
    %72 = vector.shape_cast %71 : vector<2xf32> to vector<2x1xf32>
    %cst_16 = arith.constant 0.0212765951 : f32
    %73 = vector.broadcast %cst_16 : f32 to vector<2x1xf32>
    %74 = arith.mulf %72, %73 : vector<2x1xf32>
    %75 = math.sqrt %74 : vector<2x1xf32>
    %cst_17 = arith.constant 9.99999974E-6 : f32
    %76 = vector.broadcast %cst_17 : f32 to vector<2x1xf32>
    %77 = arith.addf %75, %76 : vector<2x1xf32>
    %78 = vector.broadcast %62 : vector<2x1xf32> to vector<2x16xf32>
    %79 = arith.subf %63, %78 : vector<2x16xf32>
    %80 = vector.broadcast %77 : vector<2x1xf32> to vector<2x16xf32>
    %81 = arith.divf %79, %80 : vector<2x16xf32>
    %cst_18 = arith.constant -3.000000e+00 : f32
    %cst_19 = arith.constant 3.000000e+00 : f32
    %82 = vector.broadcast %cst_18 : f32 to vector<2x16xf32>
    %83 = arith.maximumf %82, %81 : vector<2x16xf32>
    %84 = vector.broadcast %cst_19 : f32 to vector<2x16xf32>
    %85 = arith.minimumf %84, %83 : vector<2x16xf32>
    %c0_20 = arith.constant 0 : index
    %c0_21 = arith.constant 0 : index
    %86 = vector.load %arg3[%c0_20, %c0_21] : memref<8x16xf32, #tpu.memory_space<vmem>>, vector<8x16xf32>
    %87 = vector.extract_strided_slice %86 {offsets = [0, 0], sizes = [1, 16], strides = [1, 1]} : vector<8x16xf32> to vector<1x16xf32>
    %88 = vector.extract_strided_slice %86 {offsets = [1, 0], sizes = [1, 16], strides = [1, 1]} : vector<8x16xf32> to vector<1x16xf32>
    %89 = vector.extract_strided_slice %86 {offsets = [2, 0], sizes = [1, 16], strides = [1, 1]} : vector<8x16xf32> to vector<1x16xf32>
    %90 = vector.extract_strided_slice %86 {offsets = [3, 0], sizes = [1, 16], strides = [1, 1]} : vector<8x16xf32> to vector<1x16xf32>
    %91 = vector.extract_strided_slice %86 {offsets = [4, 0], sizes = [1, 1], strides = [1, 1]} : vector<8x16xf32> to vector<1x1xf32>
    %c0_22 = arith.constant 0 : index
    %c0_23 = arith.constant 0 : index
    %92 = vector.load %arg2[%c0_22, %c0_23] : memref<16x16xf32, #tpu.memory_space<vmem>>, vector<16x16xf32>
    %cst_24 = arith.constant dense<0.000000e+00> : vector<2x16xf32>
    %93 = tpu.matmul %85, %92, %cst_24 {dimension_numbers = #tpu.dot_dimension_numbers<[1], [0], [0], [1], [0, 0, 1, 1], [], []>} : vector<2x16xf32>, vector<16x16xf32>, vector<2x16xf32> -> vector<2x16xf32>
    %94 = vector.broadcast %87 : vector<1x16xf32> to vector<2x16xf32>
    %95 = arith.addf %93, %94 : vector<2x16xf32>
    %cst_25 = arith.constant dense<0.000000e+00> : vector<2xf32>
    %96 = vector.multi_reduction <add>, %95, %cst_25 [1] : vector<2x16xf32> to vector<2xf32>
    %97 = vector.shape_cast %96 : vector<2xf32> to vector<2x1xf32>
    %cst_26 = arith.constant 1.600000e+01 : f32
    %98 = vector.broadcast %cst_26 : f32 to vector<2x1xf32>
    %99 = arith.divf %97, %98 : vector<2x1xf32>
    %100 = vector.broadcast %99 : vector<2x1xf32> to vector<2x16xf32>
    %101 = arith.subf %95, %100 : vector<2x16xf32>
    %102 = arith.mulf %101, %101 : vector<2x16xf32>
    %cst_27 = arith.constant dense<0.000000e+00> : vector<2xf32>
    %103 = vector.multi_reduction <add>, %102, %cst_27 [1] : vector<2x16xf32> to vector<2xf32>
    %104 = vector.shape_cast %103 : vector<2xf32> to vector<2x1xf32>
    %cst_28 = arith.constant 1.600000e+01 : f32
    %105 = vector.broadcast %cst_28 : f32 to vector<2x1xf32>
    %106 = arith.divf %104, %105 : vector<2x1xf32>
    %cst_29 = arith.constant 9.99999974E-6 : f32
    %107 = vector.broadcast %cst_29 : f32 to vector<2x1xf32>
    %108 = arith.addf %106, %107 : vector<2x1xf32>
    %109 = math.rsqrt %108 : vector<2x1xf32>
    %110 = vector.broadcast %109 : vector<2x1xf32> to vector<2x16xf32>
    %111 = arith.mulf %101, %110 : vector<2x16xf32>
    %112 = vector.broadcast %88 : vector<1x16xf32> to vector<2x16xf32>
    %113 = arith.mulf %111, %112 : vector<2x16xf32>
    %114 = vector.broadcast %89 : vector<1x16xf32> to vector<2x16xf32>
    %115 = arith.addf %113, %114 : vector<2x16xf32>
    %cst_30 = arith.constant 5.000000e-01 : f32
    %116 = vector.broadcast %cst_30 : f32 to vector<2x16xf32>
    %117 = arith.mulf %116, %115 : vector<2x16xf32>
    %cst_31 = arith.constant 0.707106769 : f32
    %118 = vector.broadcast %cst_31 : f32 to vector<2x16xf32>
    %119 = arith.mulf %115, %118 : vector<2x16xf32>
    %120 = math.erf %119 : vector<2x16xf32>
    %cst_32 = arith.constant 1.000000e+00 : f32
    %121 = vector.broadcast %cst_32 : f32 to vector<2x16xf32>
    %122 = arith.addf %121, %120 : vector<2x16xf32>
    %123 = arith.mulf %117, %122 : vector<2x16xf32>
    %124 = vector.broadcast %90 : vector<1x16xf32> to vector<2x16xf32>
    %125 = arith.mulf %123, %124 : vector<2x16xf32>
    %cst_33 = arith.constant dense<0.000000e+00> : vector<2xf32>
    %126 = vector.multi_reduction <add>, %125, %cst_33 [1] : vector<2x16xf32> to vector<2xf32>
    %127 = vector.shape_cast %126 : vector<2xf32> to vector<2x1xf32>
    %128 = vector.broadcast %91 : vector<1x1xf32> to vector<2x1xf32>
    %129 = arith.addf %127, %128 : vector<2x1xf32>
    %130 = arith.negf %129 : vector<2x1xf32>
    %131 = math.exp %130 : vector<2x1xf32>
    %cst_34 = arith.constant 1.000000e+00 : f32
    %132 = vector.broadcast %cst_34 : f32 to vector<2x1xf32>
    %133 = arith.addf %132, %131 : vector<2x1xf32>
    %134 = arith.divf %132, %133 : vector<2x1xf32>
    %135 = tpu.iota {dimensions = array<i32: 1>} : vector<2x2xi32>
    %c0_i32 = arith.constant 0 : i32
    %136 = vector.broadcast %c0_i32 : i32 to vector<2x2xi32>
    %137 = arith.cmpi eq, %135, %136 : vector<2x2xi32>
    %138 = vector.shape_cast %134 : vector<2x1xf32> to vector<2x1xf32>
    %139 = vector.broadcast %138 : vector<2x1xf32> to vector<2x2xf32>
    %140 = vector.shape_cast %31 : vector<2x1xf32> to vector<2x1xf32>
    %141 = vector.broadcast %140 : vector<2x1xf32> to vector<2x2xf32>
    %142 = arith.select %137, %139, %141 : vector<2x2xi1>, vector<2x2xf32>
    %c0_35 = arith.constant 0 : index
    %c0_36 = arith.constant 0 : index
    %143 = vector.load %arg4[%c0_35, %c0_36] : memref<2x2xf32, #tpu.memory_space<vmem>>, vector<2x2xf32>
    tpu.vector_store %arg4[%c0_35, %c0_36], %142 {strides = array<i32>} : memref<2x2xf32, #tpu.memory_space<vmem>>, vector<2x2xf32>,
    return
  }
  func.func @transform_0(%arg0: i32) -> (i32, i32) {
    %c1_i32 = arith.constant 1 : i32
    %c0_i32 = arith.constant 0 : i32
    return %arg0, %c1_i32 : i32, i32
  }
  func.func @transform_1(%arg0: i32) -> (i32, i32) {
    %c0_i32 = arith.constant 0 : i32
    %c0_i32_0 = arith.constant 0 : i32
    %c0_i32_1 = arith.constant 0 : i32
    return %c0_i32, %c0_i32_0 : i32, i32
  }
  func.func @transform_2(%arg0: i32) -> (i32, i32) {
    %c0_i32 = arith.constant 0 : i32
    %c0_i32_0 = arith.constant 0 : i32
    %c0_i32_1 = arith.constant 0 : i32
    return %c0_i32, %c0_i32_0 : i32, i32
  }
  func.func @transform_3(%arg0: i32) -> (i32, i32) {
    %c0_i32 = arith.constant 0 : i32
    %c0_i32_0 = arith.constant 0 : i32
    return %arg0, %c0_i32 : i32, i32
  }
}

</mosaic_0001>

<bundles_post_ra>
// kernel: tpu_custom_call.1
= control target key start
LH: loop header
LB: loop body
LE: loop exit
PB: predicated region body
PF: predicated region fallthrough
CT: control target
= control target key end

     0   :  { %8 = vsyncpa [#allocation3], 0  ;;  %s553_s0 = inlined_call_operand.hbm [shape: f32[2,264], index: 0, kind: input, shape index: {}]   ;;  %s554_s1 = inlined_call_operand.hbm [shape: f32[16,16], index: 1, kind: input, shape index: {}]   ;;  %s555_s2 = inlined_call_operand.hbm [shape: f32[8,16], index: 2, kind: input, shape index: {}]   ;;  %s556_s3 = inlined_call_operand.hbm [shape: f32[2,2], index: 3, kind: output, shape index: {}]  }
   0x1   :  { %9 = vsyncpa [#allocation6], 0 }
   0x2   :  { %10 = vsyncpa [#allocation4], 0  ;;  %s438_s12 = smov [#allocation5]   ;;  %s474_s16 = scalar_lea.hbm %s553_s0, 32 }
   0x3   :  { %s27_s13 = sshll.u32 %s438_s12, 4  ;;  %s341_s19 = scalar_lea.hbm %s554_s1, 256  ;;  %s28_s13 = int_to_ptr.vmem [resolvable:$true] %s27_s13 }
   0x4   :  { %p342_p0 = scmp.ne.s32.totalorder %s554_s1, %s341_s19  ;;  %p345_p1 = scmp.lt.u32.totalorder %s341_s19, %s554_s1 }
   0x6   :  { %p347_p2 = pnand %p345_p1, %p342_p0 }
   0x8   :  { %350 = shalt.err (!%p347_p2)
}
   0x9   :  { %s351_s24 = scalar_lea.vmem %s28_s13, 256  ;;  %p356_p4 = scmp.lt.s32.totalorder %s28_s13, %s28_s13 }
   0xa   :  { %p352_p3 = scmp.ne.s32.totalorder %s28_s13, %s351_s24  ;;  %p357_p5 = scmp.lt.s32.totalorder %s351_s24, %s351_s24 }
   0xc   :  { %p358_p6 = por %p357_p5, %p356_p4 }
   0xe   :  { %p359_p7 = pnand %p358_p6, %p352_p3 }
  0x10   :  { %362 = shalt.err (!%p359_p7)
}
  0x11   :  { %s439_s25 = smov 128   ;;  %s440_s26 = smov 8  }
  0x12   :  { %33 = dma.hbm_to_vmem [thread:$0]  %s554_s1, 256, %s28_s13, [#allocation6], %s439_s25, %s439_s25, %s440_s26  }
  0x13   :  { %s441_s29 = smov [#allocation2]   ;;  %s442_s4 = smov [#allocation7]  }
  0x14   :  { %s18_s30 = sshll.u32 %s441_s29, 4  ;;  %s40_s5 = sshll.u32 %s442_s4, 4  ;;  %s19_s30 = int_to_ptr.vmem [resolvable:$true] %s18_s30  ;;  %s488_s5 = int_to_ptr.vmem [resolvable:$true] %s40_s5 }
  0x15   :  { %s387_s8 = scalar_lea.hbm %s553_s0, 64  ;;  %s365_s11 = scalar_lea.hbm %s553_s0, 96 }
  0x16   :  { %p364_p8 = scmp.ne.s32.totalorder %s474_s16, %s387_s8  ;;  %p366_p9 = scmp.lt.u32.totalorder %s474_s16, %s553_s0 }
  0x17   :  { %p367_p10 = scmp.lt.u32.totalorder %s365_s11, %s387_s8  ;;  %p369_p12 = scmp.lt.u32.totalorder %s387_s8, %s474_s16 }
  0x19   :  { %p368_p11 = por %p367_p10, %p366_p9 }
  0x1b   :  { %p370_p13 = por %p369_p12, %p368_p11 }
  0x1d   :  { %p371_p0 = pnand %p370_p13, %p364_p8 }
  0x1f   :  { %374 = shalt.err (!%p371_p0)
}
  0x20   :  { %s375_s1 = scalar_lea.vmem %s19_s30, 32  ;;  %p380_p2 = scmp.lt.s32.totalorder %s19_s30, %s19_s30 }
  0x21   :  { %p376_p1 = scmp.ne.s32.totalorder %s19_s30, %s375_s1  ;;  %p381_p3 = scmp.lt.s32.totalorder %s375_s1, %s375_s1 }
  0x23   :  { %p382_p4 = por %p381_p3, %p380_p2 }
  0x25   :  { %p383_p5 = pnand %p382_p4, %p376_p1 }
  0x27   :  { %386 = shalt.err (!%p383_p5)
}
  0x28   :  { %21 = dma.hbm_to_vmem [thread:$0]  %s474_s16, 32, %s19_s30, [#allocation3]  }
  0x29   :  { %s388_s17 = scalar_lea.hbm %s555_s2, 128 }
  0x2a   :  { %p389_p6 = scmp.ne.s32.totalorder %s555_s2, %s388_s17  ;;  %p392_p7 = scmp.lt.u32.totalorder %s388_s17, %s555_s2 }
  0x2c   :  { %p394_p8 = pnand %p392_p7, %p389_p6 }
  0x2e   :  { %397 = shalt.err (!%p394_p8)
}
  0x2f   :  { %s398_s21 = scalar_lea.vmem %s488_s5, 128  ;;  %p403_p10 = scmp.lt.s32.totalorder %s488_s5, %s488_s5 }
  0x30   :  { %p399_p9 = scmp.ne.s32.totalorder %s488_s5, %s398_s21  ;;  %p404_p11 = scmp.lt.s32.totalorder %s398_s21, %s398_s21 }
  0x32   :  { %p405_p12 = por %p404_p11, %p403_p10 }
  0x34   :  { %p406_p13 = pnand %p405_p12, %p399_p9 }
  0x36   :  { %409 = shalt.err (!%p406_p13)
}
  0x37   :  { %43 = dma.hbm_to_vmem [thread:$0]  %s555_s2, 128, %s488_s5, [#allocation6]  }
  0x38   :  { %432 = dma.done.wait [#allocation3], 32  }
  0x39   :  { %433 = vsyncadd [#allocation3], 4294967264 }
  0x3a   :  { %434 = dma.done.wait [#allocation6], 384  }
  0x3b   :  { %435 = vsyncadd [#allocation6], 4294966912  ;;  %v53_v0 = vld [vmem:[#allocation2] sm:$0x3]  ;;  %vm557_vm0 = vcmask 1041408   ;;  %v443_v1 = vmov 0.0   ;;  %v95_v5 = vlaneseq }
  0x3c   :  { %vm54_vm1 = vcmp.ne.f32.partialorder %v53_v0, %v53_v0  ;;  %v138_v21 = vld [vmem:[#allocation5] sm:$0xff]  ;;  %v139_v22 = vld [vmem:[#allocation5 + $0x8] sm:$0xff]  ;;  %v444_v23 = vmov 0.0|0.0   ;;  %s446_s2 = smov 25   ;;  %v137_v39 = vld [vmem:[#allocation7] sm:$0xff]  ;;  %s447_s23 = smov 62  }
  0x3d   :  { %v293_v2 = vsel %vm54_vm1, 1.0, %v443_v1  ;;  %v62_v3 = vsel %vm54_vm1, 0.0, %v53_v0  ;;  %v521_v6 = vand.u32 127, %v95_v5  ;;  %307 = vmatprep.subr.bf16.mxu0 %v444_v23  ;;  %v308_v24 = vpack.c.bf16 %v139_v22, %v138_v21  ;;  %s448_s24 = smov 91   ;;  %s450_s25 = smov [#allocation8]  }
  0x3e   :  { %v58_v4 = vsel %vm557_vm0, %v293_v2, -inf  ;;  %vm63_vm4 = vcmp.eq.f32.partialorder %v62_v3, inf  ;;  %v141_v37 = vshrl.u32 %v95_v5, 7  ;;  %s283_s26 = sshll.u32 %s450_s25, 4  ;;  %s284_s26 = int_to_ptr.vmem [resolvable:$true] %s283_s26 }
  0x3f   :  { %59 = vmax.xlane.f32.xlu0 %v58_v4  ;;  %vm97_vm2 = vcmp.ge.s32.totalorder %v521_v6, 37  ;;  %vm98_vm3 = vcmp.lt.s32.totalorder %v521_v6, 53  ;;  %vm100_vm5 = vcmp.ge.s32.totalorder %v521_v6, 70  ;;  %vm101_vm6 = vcmp.lt.s32.totalorder %v521_v6, 86  ;;  %309 = vmatpush3.bf16.msra.mxu0 %v308_v24  ;;  %s410_s27 = scalar_lea.vmem %s284_s26, 32  ;;  %p415_p1 = scmp.lt.s32.totalorder %s284_s26, %s284_s26 }
  0x40   :  { %vm99_vm8 = vmand %vm97_vm2, %vm98_vm3  ;;  %vm104_vm12 = vcmp.ge.s32.totalorder %v521_v6, 103  ;;  %vm105_vm13 = vcmp.lt.s32.totalorder %v521_v6, 119  ;;  %vm558_vm2 = vcmask 1041408   ;;  %v142_v38 = vsub.s32 0, %v141_v37  ;;  %p411_p0 = scmp.ne.s32.totalorder %s284_s26, %s410_s27  ;;  %p416_p2 = scmp.lt.s32.totalorder %s410_s27, %s410_s27 }
  0x41   :  { %vm102_vm10 = vmand %vm100_vm5, %vm101_vm6  ;;  %vm147_vm6 = vcmask 130048   ;;  %v236_v56 = vsub.s32 1, %v141_v37  ;;  %v241_v57 = vsub.s32 2, %v141_v37 }
  0x42   :  { %vm103_vm15 = vmor %vm99_vm8, %vm102_vm10  ;;  %v143_v40 = vrot.slane %v137_v39, %v142_v38  ;;  %vm268_vm10 = vcmp.eq.s32.totalorder %v521_v6, 0  ;;  %p417_p3 = por %p416_p2, %p415_p1 }
  0x43   :  { %vm106_vm1 = vmand %vm104_vm12, %vm105_vm13  ;;  %v237_v58 = vrot.slane %v137_v39, %v236_v56  ;;  %v242_v61 = vrot.slane %v137_v39, %v241_v57 }
  0x44   :  { %vm107_vm0 = vmor %vm103_vm15, %vm106_vm1  ;;  %p418_p4 = pnand %p417_p3, %p411_p0 }
  0x45   :  { %vm559_vm3 = vmmov %vm558_vm2 }
  0xcc   :  { %v60_v7 = vpop.xlane.xlu0 %59 }
  0xcd   :  { %vm61_vm7 = vcmp.gt.f32.partialorder %v60_v7, 0.0 }
  0xce   :  { %vm66_vm9 = vmand %vm61_vm7, %vm63_vm4  ;;  %vm445_vm4 = vmmov 0  }
  0xcf   :  { %v67_v8 = vsel %vm66_vm9, 1.0, %v62_v3  ;;  %304 = vmatprep.mubr.msk.f32.mxu0 %vm445_vm4, %v443_v1  ;;  %v251_v1 = vsub.s32 3, %v141_v37 }
  0xd0   :  { %vm68_vm11 = vcmp.eq.f32.partialorder %v67_v8, -inf }
  0xd1   :  { %vm69_vm14 = vmand %vm61_vm7, %vm68_vm11  ;;  %vm81_vm7 = vcmask 123904   ;;  %v252_v5 = vrot.slane %v137_v39, %v251_v1  ;;  %vm275_vm11 = vcmask 9216  }
  0xd2   :  { %v529_v9 = vsel %vm69_vm14, -1.0, %v67_v8 }
  0xd3   :  { %v108_v10 = vand.u32 2147483647, %v529_v9 }
  0xd5   :  { %v109_v11 = vmax.f32 %v108_v10, 1e-05  ;;  %v449_v10 = vmov 0  }
  0xd6   :  { %323 = vset.pattern.permute.xlu1 %v449_v10  ;;  %324 = vset.pattern.permute.xlu0 %v449_v10 }
  0xd7   :  { %v110_v12 = vmin.f32 %v109_v11, 10.0 }
  0xd9   :  { %v113_v13 = vsel %vm107_vm0, %v110_v12, 0.0 }
  0xda   :  { %v114_v14 = vsel %vm558_vm2, %v113_v13, 0.0 }
  0xdb   :  { %115 = vadd.xlane.f32.xlu0 %v114_v14 }
 0x168   :  { %v116_v15 = vpop.xlane.xlu0 %115 }
 0x169   :  { %v117_v16 = vmul.f32 0.020833334, %v116_v15 }
 0x16b   :  { %v118_v17 = vsub.f32 %v113_v13, %v117_v16  ;;  %v259_v13 = vsub.s32 4, %v141_v37 }
 0x16d   :  { %v119_v18 = vsel %vm107_vm0, %v118_v17, 0.0  ;;  %v260_v14 = vrot.slane %v137_v39, %v259_v13 }
 0x16e   :  { %v120_v19 = vmul.f32 %v119_v18, %v119_v18 }
 0x170   :  { %v121_v20 = vsel %vm559_vm3, %v120_v19, 0.0 }
 0x171   :  { %122 = vadd.xlane.f32.xlu1 %v121_v20 }
 0x1fe   :  { %v123_v25 = vpop.xlane.xlu1 %122 }
 0x1ff   :  { %v124_v26 = vmul.f32 0.021276595, %v123_v25 }
 0x201   :  { %325 = vrsqrt.f32 %v124_v26  ;;  %vm127_vm5 = vcmp.eq.f32.partialorder %v124_v26, inf  ;;  %v130_v29 = vand.u32 2147483648, %v124_v26  ;;  %vm129_vm0 = vcmp.eq.f32.partialorder %v124_v26, 0.0 }
 0x20b   :  { %v326_v27 = vpop.eup %325 }
 0x20c   :  { %v126_v28 = vmul.f32 %v326_v27, %v124_v26 }
 0x20e   :  { %v128_v30 = vsel %vm127_vm5, %v124_v26, %v126_v28 }
 0x20f   :  { %v131_v31 = vsel %vm129_vm0, %v130_v29, %v128_v30 }
 0x210   :  { %v132_v32 = vadd.f32 1e-05, %v131_v31 }
 0x212   :  { %327 = vrcp.f32 %v132_v32 }
 0x21c   :  { %v328_v33 = vpop.eup %327 }
 0x21d   :  { %v134_v34 = vmul.f32 %v328_v33, %v118_v17 }
 0x21f   :  { %v294_v35 = vclamps-f32 %v134_v34, 3.0 }
 0x221   :  { %145 = vrot.lane.b32.xlu1 %v294_v35, %s446_s2 }
 0x293   :  { %v146_v36 = vpop.permute.xlu1 %145 }
 0x294   :  { %305 = vmatmul.mubr.msk.f32.vlgmr.msra.gmra.mrb[0].mxu0 %vm147_vm6, %v146_v36 }
 0x367   :  { %v216_v41 = vpop.f32.mrb[0].mxu0 }
 0x368   :  { %v217_v42 = vadd.f32 %v216_v41, %v143_v40  ;;  %v306_v43 = vpop.f32.mrb[1].mxu0 }
 0x36a   :  { %v220_v44 = vsel %vm81_vm7, %v217_v42, 0.0 }
 0x36b   :  { %221 = vadd.xlane.f32.xlu0 %v220_v44 }
 0x3f8   :  { %v222_v45 = vpop.xlane.xlu0 %221 }
 0x3f9   :  { %v224_v46 = vmul.f32 0.0625, %v222_v45 }
 0x3fb   :  { %v225_v47 = vsub.f32 %v217_v42, %v224_v46 }
 0x3fd   :  { %v226_v48 = vmul.f32 %v225_v47, %v225_v47 }
 0x3ff   :  { %v227_v49 = vsel %vm81_vm7, %v226_v48, 0.0 }
 0x400   :  { %228 = vadd.xlane.f32.xlu0 %v227_v49 }
 0x416   :  { %72 = vrot.lane.b32.xlu0 %v529_v9, %s447_s23 }
 0x48d   :  { %v229_v50 = vpop.xlane.xlu0 %228 }
 0x48e   :  { %v230_v51 = vmul.f32 0.0625, %v229_v50 }
 0x490   :  { %v231_v52 = vadd.f32 1e-05, %v230_v51 }
 0x491   :  { %v73_v53 = vpop.permute.xlu0 %72 }
 0x492   :  { %329 = vrsqrt.f32 %v231_v52  ;;  %v75_v54 = vsub.f32 %v529_v9, %v73_v53 }
 0x494   :  { %v76_v55 = vmul.f32 %v75_v54, %v75_v54 }
 0x496   :  { %78 = vrot.lane.b32.xlu0 %v76_v55, %s448_s24 }
 0x49c   :  { %v330_v59 = vpop.eup %329 }
 0x49d   :  { %v233_v60 = vmul.f32 %v330_v59, %v225_v47 }
 0x49f   :  { %v238_v62 = vmul.f32 %v237_v58, %v233_v60 }
 0x4a1   :  { %v243_v63 = vadd.f32 %v242_v61, %v238_v62 }
 0x4a3   :  { %v245_v0 = vmul.f32 0.70710677, %v243_v63  ;;  %v244_v3 = vmul.f32 0.5, %v243_v63 }
 0x4a5   :  { %331 = verf.f32 %v245_v0 }
 0x4af   :  { %v332_v2 = vpop.eup %331 }
 0x4b0   :  { %v247_v4 = vadd.f32 1.0, %v332_v2 }
 0x4b2   :  { %v248_v7 = vmul.f32 %v247_v4, %v244_v3 }
 0x4b4   :  { %v253_v8 = vmul.f32 %v252_v5, %v248_v7 }
 0x4b6   :  { %v254_v9 = vsel %vm81_vm7, %v253_v8, 0.0 }
 0x4b7   :  { %255 = vadd.xlane.f32.xlu1 %v254_v9 }
 0x508   :  { %v79_v11 = vpop.permute.xlu0 %78 }
 0x509   :  { %v82_v12 = vsel %vm81_vm7, %v79_v11, 0.0 }
 0x50a   :  { %83 = vadd.xlane.f32.xlu0 %v82_v12 }
 0x544   :  { %v256_v15 = vpop.xlane.xlu1 %255 }
 0x545   :  { %v261_v16 = vadd.f32 %v260_v14, %v256_v15 }
 0x547   :  { %v296_v17 = vmul.f32 -1.442695, %v261_v16 }
 0x549   :  { %333 = vpow2.f32 %v296_v17 }
 0x553   :  { %v334_v18 = vpop.eup %333 }
 0x554   :  { %v265_v19 = vadd.f32 1.0, %v334_v18 }
 0x556   :  { %335 = vrcp.f32 %v265_v19 }
 0x560   :  { %v336_v20 = vpop.eup %335 }
 0x561   :  { %271 = vperm.xlu1 %323, %v336_v20  }
 0x597   :  { %v84_v21 = vpop.xlane.xlu0 %83 }
 0x598   :  { %337 = vrsqrt.f32 %v84_v21  ;;  %vm87_vm8 = vcmp.eq.f32.partialorder %v84_v21, inf  ;;  %v90_v25 = vand.u32 2147483648, %v84_v21  ;;  %vm89_vm9 = vcmp.eq.f32.partialorder %v84_v21, 0.0 }
 0x5a2   :  { %v338_v22 = vpop.eup %337 }
 0x5a3   :  { %v86_v23 = vmul.f32 %v338_v22, %v84_v21 }
 0x5a5   :  { %v88_v24 = vsel %vm87_vm8, %v84_v21, %v86_v23 }
 0x5a6   :  { %v91_v26 = vsel %vm89_vm9, %v90_v25, %v88_v24 }
 0x5a7   :  { %v92_v27 = vmul.f32 -0.015625, %v91_v26 }
 0x5a9   :  { %v93_v28 = vmul.f32 1.442695, %v92_v27 }
 0x5ab   :  { %339 = vpow2.f32 %v93_v28 }
 0x5b5   :  { %v340_v29 = vpop.eup %339 }
 0x5e0   :  { %v272_v30 = vpop.permute.xlu1 %271 }
 0x5e1   :  { %v274_v31 = vsel %vm268_vm10, %v272_v30, %v340_v29 }
 0x5e2   :  { %276 = vst.msk [vmem:[#allocation8] sm:$0x3] %vm275_vm11, %v274_v31 }
 0x5e3   :  { %421 = shalt.err (!%p418_p4)
}
 0x5e4   :  { %s422_s30 = scalar_lea.hbm %s556_s3, 32 }
 0x5e5   :  { %p423_p5 = scmp.ne.s32.totalorder %s556_s3, %s422_s30  ;;  %p426_p6 = scmp.lt.u32.totalorder %s422_s30, %s556_s3 }
 0x5e7   :  { %p428_p7 = pnand %p426_p6, %p423_p5 }
 0x5e9   :  { %431 = shalt.err (!%p428_p7)
}
 0x5ea   :  { %286 = dma.vmem_to_hbm [thread:$0]  %s284_s26, 32, %s556_s3, [#allocation4]  }
 0x5eb   :  { %436 = dma.done.wait [#allocation4], 32  }
 0x5ec   :  { %437 = vsyncadd [#allocation4], 4294967264 }
 0x5ed   :  { %290 = vsyncpa [#allocation3], 1 }
 0x5ee   :  { %291 = vsyncpa [#allocation6], 1 }
 0x5ef   :  { %292 = vsyncpa [#allocation4], 1 }

</bundles_post_ra>
